<compile_context>
chip_gen: v7x
topology: tpu7x:2x2x1
jax: 0.10.0
libtpu: 0.0.40
codegen_flags: <defaults>
</compile_context>

<pallas_src>
import functools

import jax
import jax.numpy as jnp
from jax import lax
from jax.experimental import pallas as pl
from jax.experimental.pallas import tpu as pltpu


def _pooler_kernel(x_ref, w_ref, b_ref, o_ref, acc_ref, *, inv_s):
    """One (batch-tile, token-tile) grid step.

    x_ref:   (TB, TS, H)   activations, input dtype (no full upcast)
    w_ref:   (H_out, H_in) nn.Linear weight, NOT pre-transposed
    b_ref:   (1, H_out)    bias (float32)
    o_ref:   (TB, H_out)   output tile
    acc_ref: (TB, H)       float32 running token-sum accumulator
    """
    s = pl.program_id(1)

    @pl.when(s == 0)
    def _init():
        acc_ref[...] = jnp.zeros_like(acc_ref)

    # Accumulate this S-tile's token sum in float32 (VPU sublane reduce).
    acc_ref[...] += jnp.sum(x_ref[...], axis=1, dtype=jnp.float32)

    @pl.when(s == pl.num_programs(1) - 1)
    def _finalize():
        # mean = sum * (1/S); 1/S is a compile-time constant.
        pooled = (acc_ref[...] * inv_s).astype(w_ref.dtype)  # MXU-native dtype
        # y = pooled @ W.T : contract pooled axis 1 with weight axis 1 (H_in),
        # so the MXU consumes the nn.Linear weight directly (no HBM transpose).
        y = lax.dot_general(
            pooled, w_ref[...],
            dimension_numbers=(((1,), (1,)), ((), ())),
            preferred_element_type=jnp.float32,
        )
        y = y + b_ref[...]
        o_ref[...] = jnp.tanh(y).astype(o_ref.dtype)  # tanh -> EUP slot


def _pick_tile(n, cap, align):
    """Largest divisor of n that is <= cap and a multiple of `align`.
    Returns n itself if n <= cap or no aligned divisor exists."""
    if n <= cap:
        return n
    best = 0
    for t in range(align, cap + 1, align):
        if n % t == 0:
            best = t
    return best if best > 0 else n


def _choose_tiles(B, S, H, itemsize):
    # ~6 MiB per activation tile; Pallas double-buffers it (~12 MiB), which
    # together with the resident weight/bias/accumulator stays well inside
    # v7x's 32 MiB scoped-VMEM default.
    x_budget = 6 * 1024 * 1024
    TB = _pick_tile(B, 128, 8)
    bytes_per_token_row = max(1, TB * H * itemsize)
    if TB * S * H * itemsize <= x_budget:
        TS = S  # whole token axis resident: single reduction step per batch tile
    else:
        ts_cap = max(8, x_budget // bytes_per_token_row)
        TS = _pick_tile(S, ts_cap, 8)
    return TB, TS


def pooler_forward(hidden_states, weight, bias, *, tile_b=None, tile_s=None):
    """hidden_states: (B, S, H); weight: (H_out, H_in) like nn.Linear; bias: (H_out,)."""
    B, S, H = hidden_states.shape
    itemsize = jnp.dtype(hidden_states.dtype).itemsize

    auto_tb, auto_ts = _choose_tiles(B, S, H, itemsize)
    TB = tile_b if tile_b is not None else auto_tb
    TS = tile_s if tile_s is not None else auto_ts

    assert B % TB == 0 and S % TS == 0, "tile sizes must divide (B, S)"

    grid = (B // TB, S // TS)
    bias2d = bias.reshape(1, H).astype(jnp.float32)

    kernel = functools.partial(_pooler_kernel, inv_s=1.0 / S)

    return pl.pallas_call(
        kernel,
        out_shape=jax.ShapeDtypeStruct((B, H), hidden_states.dtype),
        grid_spec=pltpu.PrefetchScalarGridSpec(
            num_scalar_prefetch=0,
            grid=grid,
            in_specs=[
                pl.BlockSpec((TB, TS, H), lambda b, s: (b, s, 0)),  # activations
                pl.BlockSpec((H, H), lambda b, s: (0, 0)),          # weight (resident)
                pl.BlockSpec((1, H), lambda b, s: (0, 0)),          # bias (resident)
            ],
            out_specs=pl.BlockSpec((TB, H), lambda b, s: (b, 0)),
            scratch_shapes=[pltpu.VMEM((TB, H), jnp.float32)],
        ),
        compiler_params=pltpu.CompilerParams(
            # Batch axis is independent (shards across v7x's 2 TensorCores);
            # S is the reduction axis -> "arbitrary", innermost.
            dimension_semantics=("parallel", "arbitrary"),
        ),
    )(hidden_states, weight, bias2d)


if __name__ == "__main__":
    # Small shapes consistent with the module: batch=2, tokens=16, hidden=32.
    # tile_s=8 forces a 2-step token reduction so the accumulator
    # init/accumulate/finalize path is actually exercised.
    B, S, H = 2, 16, 32

    key = jax.random.PRNGKey(0)
    kx, kw, kb = jax.random.split(key, 3)

    hidden_states = jax.random.normal(kx, (B, S, H), dtype=jnp.float32)
    # Deterministic "initialization" of the Linear(H, H) parameters.
    weight = jax.random.normal(kw, (H, H), dtype=jnp.float32) * 0.02
    bias = jax.random.normal(kb, (H,), dtype=jnp.float32) * 0.02

    out = pooler_forward(hidden_states, weight, bias, tile_s=8)
    out = jax.block_until_ready(out)

    # Reference check in plain JAX (same math as the PyTorch module).
    ref = jnp.tanh(jnp.mean(hidden_states, axis=1) @ weight.T + bias)
    assert out.shape == (B, H)
    assert jnp.allclose(out, ref, atol=1e-5, rtol=1e-5)

    # Also exercise the auto-tiling path (single-step reduction, S resident).
    out_auto = jax.block_until_ready(pooler_forward(hidden_states, weight, bias))
    assert jnp.allclose(out_auto, ref, atol=1e-5, rtol=1e-5)

    print("KERNEL_OK")
</pallas_src>

<mosaic_0001>
module attributes {stable_mosaic.version = 11 : i64} {
  func.func @_pooler_kernel(%arg0: i32, %arg1: i32, %arg2: memref<2x8x32xf32, #tpu.memory_space<vmem>>, %arg3: memref<32x32xf32, #tpu.memory_space<vmem>>, %arg4: memref<1x32xf32, #tpu.memory_space<vmem>>, %arg5: memref<2x32xf32, #tpu.memory_space<vmem>>, %arg6: memref<2x32xf32, #tpu.memory_space<vmem>>) attributes {dimension_semantics = [#tpu.dimension_semantics<parallel>, #tpu.dimension_semantics<arbitrary>], iteration_bounds = array<i64: 1, 2>, scalar_prefetch = 0 : i64, scratch_operands = 1 : i64, tpu.core_type = #tpu.core_type<tc>, window_params = [{transform_indices = @transform_0, window_bounds = array<i64: 2, 8, 32>}, {pipeline_mode = #tpu.pipeline_mode<synchronous>, transform_indices = @transform_1, window_bounds = array<i64: 32, 32>}, {pipeline_mode = #tpu.pipeline_mode<synchronous>, transform_indices = @transform_2, window_bounds = array<i64: 1, 32>}, {transform_indices = @transform_3, window_bounds = array<i64: 2, 32>}]} {
    %c0_i32 = arith.constant 0 : i32
    %0 = arith.cmpi eq, %arg1, %c0_i32 : i32
    %1 = arith.extui %0 : i1 to i32
    %c0_i32_0 = arith.constant 0 : i32
    %2 = arith.cmpi ne, %1, %c0_i32_0 : i32
    scf.if %2 {
      %cst_8 = arith.constant 0.000000e+00 : f32
      %11 = vector.broadcast %cst_8 : f32 to vector<2x32xf32>
      %c0_9 = arith.constant 0 : index
      %c0_10 = arith.constant 0 : index
      %12 = vector.load %arg6[%c0_9, %c0_10] : memref<2x32xf32, #tpu.memory_space<vmem>>, vector<2x32xf32>
      tpu.vector_store %arg6[%c0_9, %c0_10], %11 {strides = array<i32>} : memref<2x32xf32, #tpu.memory_space<vmem>>, vector<2x32xf32>,
    } else {
    }
    %c0 = arith.constant 0 : index
    %c0_1 = arith.constant 0 : index
    %3 = vector.load %arg6[%c0, %c0_1] : memref<2x32xf32, #tpu.memory_space<vmem>>, vector<2x32xf32>
    %c0_2 = arith.constant 0 : index
    %c0_3 = arith.constant 0 : index
    %c0_4 = arith.constant 0 : index
    %4 = vector.load %arg2[%c0_2, %c0_3, %c0_4] : memref<2x8x32xf32, #tpu.memory_space<vmem>>, vector<2x8x32xf32>
    %cst = arith.constant dense<0.000000e+00> : vector<2x32xf32>
    %5 = vector.multi_reduction <add>, %4, %cst [1] : vector<2x8x32xf32> to vector<2x32xf32>
    %6 = arith.addf %3, %5 : vector<2x32xf32>
    %c0_5 = arith.constant 0 : index
    %c0_6 = arith.constant 0 : index
    %7 = vector.load %arg6[%c0_5, %c0_6] : memref<2x32xf32, #tpu.memory_space<vmem>>, vector<2x32xf32>
    tpu.vector_store %arg6[%c0_5, %c0_6], %6 {strides = array<i32>} : memref<2x32xf32, #tpu.memory_space<vmem>>, vector<2x32xf32>,
    %c1_i32 = arith.constant 1 : i32
    %8 = arith.cmpi eq, %arg1, %c1_i32 : i32
    %9 = arith.extui %8 : i1 to i32
    %c0_i32_7 = arith.constant 0 : i32
    %10 = arith.cmpi ne, %9, %c0_i32_7 : i32
    scf.if %10 {
      %c0_8 = arith.constant 0 : index
      %c0_9 = arith.constant 0 : index
      %11 = vector.load %arg6[%c0_8, %c0_9] : memref<2x32xf32, #tpu.memory_space<vmem>>, vector<2x32xf32>
      %cst_10 = arith.constant 6.250000e-02 : f32
      %12 = vector.broadcast %cst_10 : f32 to vector<2x32xf32>
      %13 = arith.mulf %11, %12 : vector<2x32xf32>
      %c0_11 = arith.constant 0 : index
      %c0_12 = arith.constant 0 : index
      %14 = vector.load %arg3[%c0_11, %c0_12] : memref<32x32xf32, #tpu.memory_space<vmem>>, vector<32x32xf32>
      %cst_13 = arith.constant dense<0.000000e+00> : vector<2x32xf32>
      %15 = tpu.matmul %13, %14, %cst_13 {dimension_numbers = #tpu.dot_dimension_numbers<[1], [1], [0], [0], [0, 0, 1, 0], [], []>} : vector<2x32xf32>, vector<32x32xf32>, vector<2x32xf32> -> vector<2x32xf32>
      %c0_14 = arith.constant 0 : index
      %c0_15 = arith.constant 0 : index
      %16 = vector.load %arg4[%c0_14, %c0_15] : memref<1x32xf32, #tpu.memory_space<vmem>>, vector<1x32xf32>
      %17 = vector.broadcast %16 : vector<1x32xf32> to vector<2x32xf32>
      %18 = arith.addf %15, %17 : vector<2x32xf32>
      %19 = math.tanh %18 : vector<2x32xf32>
      %c0_16 = arith.constant 0 : index
      %c0_17 = arith.constant 0 : index
      %20 = vector.load %arg5[%c0_16, %c0_17] : memref<2x32xf32, #tpu.memory_space<vmem>>, vector<2x32xf32>
      tpu.vector_store %arg5[%c0_16, %c0_17], %19 {strides = array<i32>} : memref<2x32xf32, #tpu.memory_space<vmem>>, vector<2x32xf32>,
    } else {
    }
    return
  }
  func.func @transform_0(%arg0: i32, %arg1: i32) -> (i32, i32, i32) {
    %c0_i32 = arith.constant 0 : i32
    %c0_i32_0 = arith.constant 0 : i32
    return %arg0, %arg1, %c0_i32 : i32, i32, i32
  }
  func.func @transform_1(%arg0: i32, %arg1: i32) -> (i32, i32) {
    %c0_i32 = arith.constant 0 : i32
    %c0_i32_0 = arith.constant 0 : i32
    %c0_i32_1 = arith.constant 0 : i32
    return %c0_i32, %c0_i32_0 : i32, i32
  }
  func.func @transform_2(%arg0: i32, %arg1: i32) -> (i32, i32) {
    %c0_i32 = arith.constant 0 : i32
    %c0_i32_0 = arith.constant 0 : i32
    %c0_i32_1 = arith.constant 0 : i32
    return %c0_i32, %c0_i32_0 : i32, i32
  }
  func.func @transform_3(%arg0: i32, %arg1: i32) -> (i32, i32) {
    %c0_i32 = arith.constant 0 : i32
    %c0_i32_0 = arith.constant 0 : i32
    return %arg0, %c0_i32 : i32, i32
  }
}

</mosaic_0001>

<bundles_post_ra>
// kernel: tpu_custom_call.1
= control target key start
LH: loop header
LB: loop body
LE: loop exit
PB: predicated region body
PF: predicated region fallthrough
CT: control target
= control target key end

     0   :  { %8 = vsyncpa [#allocation4], 0  ;;  %s935_s0 = inlined_call_operand.hbm [shape: f32[2,16,32], index: 0, kind: input, shape index: {}]   ;;  %s936_s1 = inlined_call_operand.hbm [shape: f32[32,32], index: 1, kind: input, shape index: {}]   ;;  %s937_s2 = inlined_call_operand.vmem [shape: f32[1,32], index: 2, kind: input, shape index: {}]   ;;  %s938_s3 = inlined_call_operand.hbm [shape: f32[2,32], index: 3, kind: output, shape index: {}]  }
   0x1   :  { %10 = vsyncpa [#allocation4 + $0x1], 0 }
   0x2   :  { %11 = vsyncpa [#allocation7], 0 }
   0x3   :  { %12 = vsyncpa [#allocation5], 0  ;;  %s733_s12 = smov 0   ;;  %s735_s13 = smov 0  }
   0x4   :  { %s737_s14 = smov 0   ;;  %s739_s15 = smov 0  }
   0x5   :  { %s741_s16 = smov 0   ;;  %s743_s17 = smov 0  }
   0x6 LB: > { %s432_s18 = sadd.s32 4294967295, %s701_s17   ;;  %p46_p0 = scmp.ne.s32.totalorder %s689_s14, %s685_s13  ;;  %s701_s17 = sphi %s743_s17, %s18_s17   ;;  %s697_s16 = sphi %s741_s16, %s959_s16   ;;  %s693_s15 = sphi %s739_s15, %s958_s15   ;;  %s689_s14 = sphi %s737_s14, %s957_s14   ;;  %s685_s13 = sphi %s735_s13, %s956_s13   ;;  %s681_s12 = sphi %s733_s12, %s955_s12  }
   0x7   : > { %p47_p1 = scmp.eq.s32.totalorder %s701_s17, 0  ;;  %p52_p2 = scmp.ne.s32.totalorder %s685_s13, %s681_s12 }
   0x8   : > { %p768_p3 = scmp.eq.s32.totalorder %s432_s18, 0  ;;  %p433_p4 = scmp.ge.s32.totalorder %s701_s17, 1 }
   0x9   : > { %p48_p5 = por %p47_p1, %p46_p0  ;;  %p131_p6 = scmp.lt.s32.totalorder %s701_s17, 3 }
   0xa   : > { %s944_s19 = scalar_select %p768_p3, 1, 0 }
   0xb   : > { %p776_p7 = por %p768_p3, %p52_p2  ;;  %p780_p8 = pnand %p433_p4, %p131_p6 }
   0xc   : > { %s703_s22 = smov [#allocation6]   ;;  %p496_p11 = scmp.lt.s32.totalorder %s701_s17, 2 }
   0xd   : > { %s945_s20 = scalar_select %p776_p7, 1, 0 }
   0xe   : > { %s946_s21 = scalar_select %p780_p8, 1, 0 }
   0xf   : > { %s143_s23 = sshll.u32 %s703_s22, 4  ;;  %p487_p9 = pneg %p780_p8  ;;  %s144_s23 = int_to_ptr.vmem [resolvable:$true] %s143_s23 }
  0x10   : > { %s39_s25 = sadd.s32 1, %s689_s14  ;;  %p794_p12 = pnand %p496_p11, %p48_p5 }
  0x11   : > { %p788_p10 = pnand %p487_p9, %p768_p3  ;;  %s559_s29 = scalar_lea.hbm %s936_s1, 512 }
  0x12   : > { %s948_s26 = scalar_select %p794_p12, 1, 0 }
  0x13   : > { %p560_p13 = scmp.ne.s32.totalorder %s936_s1, %s559_s29  ;;  %p561_p0 = pneg %p788_p10 }
  0x14   : > { %p566_p4 = scmp.lt.u32.totalorder %s559_s29, %s936_s1 }
  0x15   : > { %p562_p1 = pnand %p561_p0, %p560_p13 }
  0x17   : > { %p563_p2 = pneg %p562_p1 }
  0x19   : > { %p568_p5 = pnand %p566_p4, %p563_p2 }
  0x1b   : > { %571 = shalt.err (!%p568_p5)
}
  0x1c   : > { %s572_s7 = scalar_lea.vmem %s144_s23, 512  ;;  %p580_p3 = scmp.lt.s32.totalorder %s144_s23, %s144_s23 }
  0x1d   : > { %p573_p6 = scmp.ne.s32.totalorder %s144_s23, %s572_s7  ;;  %p581_p7 = scmp.lt.s32.totalorder %s572_s7, %s572_s7 }
  0x1f   : > { %p575_p9 = pnand %p573_p6, %p561_p0  ;;  %p582_p8 = por %p581_p7, %p580_p3 }
  0x21   : > { %p576_p11 = pneg %p575_p9 }
  0x23   : > { %p583_p12 = pnand %p582_p8, %p576_p11 }
  0x25   : > { %586 = shalt.err (!%p583_p12)
}
  0x26   : > { %s704_s8 = smov 128   ;;  %s705_s9 = smov 8  }
  0x27   : > { %490 = dma.hbm_to_vmem [thread:$0]  (!%p788_p10), %s936_s1, 512, %s144_s23, [#allocation7], %s704_s8, %s704_s8, %s705_s9  }
  0x28   : > { %s27_s12 = sadd.s32 1, %s697_s16  ;;  %s160_s22 = sand.u32 1, %s689_s14  }
  0x29   : > { %p28_p3 = scmp.ge.s32.totalorder %s27_s12, 2  ;;  %s436_s27 = sshll.u32 %s160_s22, 4 }
  0x2a   : > { %s437_s28 = sshll.u32 %s697_s16, 7  ;;  %s164_s23 = scalar_lea.vmem [#allocation3], %s436_s27 }
  0x2b   : > { %s961_s12 = smov (%p28_p3, %s27_s12), 0  ;;  %s825_s24 = scalar_lea.hbm %s935_s0, %s437_s28 }
  0x2c   : > { %s35_s4 = ssub.s32 %s697_s16, %s961_s12  ;;  %s173_s5 = sshll.u32 %s164_s23, 4  ;;  %s829_s5 = int_to_ptr.vmem [resolvable:$true] %s173_s5 }
  0x2d   : > { %p37_p7 = scmp.eq.s32.totalorder %s35_s4, 0  ;;  %s836_s7 = scalar_lea.sflag [#allocation4], %s160_s22 }
  0x2e   : > { %s587_s10 = scalar_lea.hbm %s825_s24, 256  ;;  %p949_p10 = scmp.ne.s32.totalorder %s948_s26, 0 }
  0x2f   : > { %s834_s6 = scalar_select %p37_p7, %s689_s14, %s39_s25  }
  0x30   : > { %p588_p8 = scmp.ne.s32.totalorder %s825_s24, %s587_s10  ;;  %p589_p12 = pneg %p949_p10 }
  0x31   : > { %s592_s27 = scalar_lea.hbm %s935_s0, 512  ;;  %p593_p1 = scmp.lt.u32.totalorder %s825_s24, %s935_s0 }
  0x32   : > { %p590_p13 = pnand %p589_p12, %p588_p8  ;;  %p594_p2 = scmp.lt.u32.totalorder %s592_s27, %s587_s10 }
  0x33   : > { %p596_p5 = scmp.lt.u32.totalorder %s587_s10, %s825_s24 }
  0x34   : > { %p591_p0 = pneg %p590_p13  ;;  %p595_p4 = por %p594_p2, %p593_p1 }
  0x36   : > { %p597_p6 = por %p596_p5, %p595_p4 }
  0x38   : > { %p598_p9 = pnand %p597_p6, %p591_p0 }
  0x3a   : > { %601 = shalt.err (!%p598_p9)
}
  0x3b   : > { %s602_s25 = scalar_lea.vmem %s829_s5, 256  ;;  %s706_s22 = smov [#allocation3]  }
  0x3c   : > { %p603_p11 = scmp.ne.s32.totalorder %s829_s5, %s602_s25  ;;  %s607_s4 = sshll.u32 %s706_s22, 4  ;;  %s608_s4 = int_to_ptr.vmem [resolvable:$false] %s607_s4 }
  0x3d   : > { %s609_s23 = scalar_lea.vmem %s608_s4, 512  ;;  %p610_p8 = scmp.lt.s32.totalorder %s829_s5, %s608_s4 }
  0x3e   : > { %p605_p3 = pnand %p603_p11, %p589_p12  ;;  %p611_p13 = scmp.lt.s32.totalorder %s609_s23, %s602_s25 }
  0x40   : > { %p606_p7 = pneg %p605_p3  ;;  %p612_p1 = por %p611_p13, %p610_p8 }
  0x42   : > { %p613_p2 = pnand %p612_p1, %p606_p7 }
  0x44   : > { %616 = shalt.err (!%p613_p2)
}
  0x45   : > { %s707_s10 = smov 256   ;;  %p950_p12 = scmp.ne.s32.totalorder %s946_s21, 0 }
  0x46   : > { %494 = dma.hbm_to_vmem [thread:$0]  (!%p949_p10), %s825_s24, 256, %s829_s5, %s836_s7, %s707_s10, %s704_s8, %s705_s9  }
  0x47   : > { %185 = sbr.rel (%p950_p12) target bundleno = 369 (0x171), region = 32  ;;  %s187_s11 = sand.u32 (!%p950_p12), 1, %s685_s13  }
  0x48   : > { %s439_s28 = sshll.u32 (!%p950_p12), %s187_s11, 4  ;;  %s188_s27 = scalar_lea.sflag (!%p950_p12), [#allocation4], %s187_s11 }
  0x49   : > { %s191_s29 = scalar_lea.vmem (!%p950_p12), [#allocation3], %s439_s28  ;;  %p951_p0 = scmp.ne.s32.totalorder (!%p950_p12), %s945_s20, 0 }
  0x4e   : > { %668 = dma.done.wait (%p951_p0), %s188_s27, 256  }
  0x4f   : > { %670 = vsyncadd (%p951_p0), %s188_s27, 4294967040  ;;  %p952_p4 = scmp.ne.s32.totalorder %s944_s19, 0 }
  0x51   : > { %672 = dma.done.wait (%p952_p4), [#allocation7], 512  }
  0x52   : > { %674 = vsyncadd (%p952_p4), [#allocation7], 4294966784  ;;  %p441_p10 = scmp.ne.s32.totalorder %s693_s15, 0 }
  0x53   : > { %vm218_vm0 = vcmask (!%p441_p10), 254976   ;;  %v708_v0 = vmov (!%p441_p10), 0.0  }
  0x54   : > { %217 = sbr.rel (%p441_p10) target bundleno = 91 (0x5b), region = 44  ;;  %219 = vst.msk [vmem:[#allocation2] sm:$0x3] (!%p441_p10), %vm218_vm0, %v708_v0 }
  0x5b PF: > { %v221_v1 = vld [vmem:[%s191_s29] sm:$0xff]  ;;  %v222_v2 = vld [vmem:[%s191_s29 + $0x8] sm:$0xff]  ;;  %vm223_vm1 = vcmask 261120   ;;  %vm240_vm2 = vcmask 1041409   ;;  %vm244_vm3 = vcmask 254976   ;;  %p442_p5 = scmp.ne.s32.totalorder %s693_s15, 1 }
  0x5c   : > { %v224_v3 = vsel %vm223_vm1, %v221_v1, 0.0  ;;  %v231_v4 = vsel %vm223_vm1, %v222_v2, 0.0  ;;  %v220_v15 = vld [vmem:[#allocation2] sm:$0x3]  ;;  %v252_v20 = vld [vmem:[#allocation6] sm:$0xff] (!%p442_p5)  ;;  %v253_v21 = vld [vmem:[#allocation6 + $0x8] sm:$0xff] (!%p442_p5) }
  0x5d   : > { %v225_v5 = vrot.slane %v224_v3, 4  ;;  %v232_v6 = vrot.slane %v231_v4, 4  ;;  %vm471_vm4 = vmpackc.low (!%p442_p5), %vm223_vm1, %vm223_vm1  ;;  %v709_v22 = vmov (!%p442_p5), 0.0|0.0   ;;  %v470_v23 = vpack.c.bf16 (!%p442_p5), %v253_v21, %v252_v20  ;;  %v254_v25 = vld [vmem:[#allocation6 + $0x10] sm:$0xff] (!%p442_p5)  ;;  %v255_v26 = vld [vmem:[#allocation6 + $0x18] sm:$0xff] (!%p442_p5) }
  0x5e   : > { %469 = vmatprep.subr.bf16.mxu0 (!%p442_p5), %v709_v22  ;;  %vm710_vm5 = vmmov (!%p442_p5), 0   ;;  %v711_v24 = vmov (!%p442_p5), 0.0   ;;  %v474_v27 = vpack.c.bf16 (!%p442_p5), %v255_v26, %v254_v25  ;;  %v443_v30 = vld [vmem:[%s937_s2] ss:$0 sm:$0xff] (!%p442_p5) }
  0x5f   : > { %v226_v7 = vadd.f32 %v225_v5, %v224_v3  ;;  %v233_v8 = vadd.f32 %v232_v6, %v231_v4  ;;  %466 = vmatprep.mubr.msk.f32.mxu0 (!%p442_p5), %vm710_vm5, %v711_v24  ;;  %472 = vmatpush3.bf16.xpose.msk.msra.mxu0 (!%p442_p5), %vm471_vm4, %v470_v23 }
  0x60   : > { %473 = vmatprep.subr.bf16.mxu0 (!%p442_p5), %v709_v22 }
  0x61   : > { %v227_v9 = vrot.slane %v226_v7, 2  ;;  %v234_v10 = vrot.slane %v233_v8, 2 }
  0x63   : > { %v228_v11 = vadd.f32 %v227_v9, %v226_v7  ;;  %v235_v12 = vadd.f32 %v234_v10, %v233_v8 }
  0x65   : > { %v229_v13 = vrot.slane %v228_v11, 1  ;;  %v236_v14 = vrot.slane %v235_v12, 1 }
  0x66   : > { %249 = sbr.rel (%p442_p5) target bundleno = 344 (0x158), region = 48 }
  0x67   : > { %v230_v16 = vadd.f32 %v229_v13, %v228_v11  ;;  %v237_v17 = vadd.f32 %v236_v14, %v235_v12  ;;  %476 = vmatpush3.bf16.xpose.msk.msra.mxu0 (!%p442_p5), %vm471_vm4, %v474_v27 }
  0x69   : > { %v241_v18 = vsel %vm240_vm2, %v237_v17, %v230_v16 }
  0x6a   : > { %v243_v19 = vadd.f32 %v241_v18, %v220_v15 }
  0x6c   : > { %245 = vst.msk [vmem:[#allocation2] sm:$0x3] %vm244_vm3, %v243_v19 }
  0x73   : > { %v250_v28 = vld [vmem:[#allocation2] sm:$0x3] }
  0x74   : > { %v251_v29 = vmul.f32 0.0625, %v250_v28 }
  0x76   : > { %467 = vmatmul.mubr.msk.f32.vlgmr.msra.gmra.mrb[0].mxu0 %vm223_vm1, %v251_v29 }
 0x149   : > { %v344_v31 = vpop.f32.mrb[0].mxu0 }
 0x14a   : > { %v345_v32 = vadd.f32 %v443_v30, %v344_v31  ;;  %v468_v33 = vpop.f32.mrb[1].mxu0 }
 0x14c   : > { %557 = vtanh.f32 %v345_v32 }
 0x156   : > { %v558_v34 = vpop.eup %557 }
 0x157   : > { %349 = vst.msk [vmem:[#allocation8] sm:$0x3] %vm244_vm3, %v558_v34 }
 0x158 PF: > { %p891_p6 = scmp.eq.s32.totalorder %s432_s18, 1  ;;  %s712_s21 = smov [#allocation8]  }
 0x159   : > { %s359_s26 = sshll.u32 %s712_s21, 4  ;;  %s360_s26 = int_to_ptr.vmem [resolvable:$true] %s359_s26 }
 0x15a   : > { %s617_s8 = scalar_lea.vmem %s360_s26, 32  ;;  %p624_p7 = scmp.lt.s32.totalorder %s360_s26, %s360_s26 }
 0x15b   : > { %p618_p9 = scmp.ne.s32.totalorder %s360_s26, %s617_s8  ;;  %p625_p8 = scmp.lt.s32.totalorder %s617_s8, %s617_s8 }
 0x15d   : > { %p619_p11 = pnand %p618_p9, %p891_p6  ;;  %p626_p13 = por %p625_p8, %p624_p7 }
 0x15f   : > { %p620_p3 = pneg %p619_p11 }
 0x161   : > { %p627_p1 = pnand %p626_p13, %p620_p3 }
 0x163   : > { %630 = shalt.err (!%p627_p1)
}
 0x164   : > { %s631_s18 = scalar_lea.hbm %s938_s3, 32 }
 0x165   : > { %p632_p2 = scmp.ne.s32.totalorder %s938_s3, %s631_s18  ;;  %p637_p4 = scmp.lt.u32.totalorder %s631_s18, %s938_s3 }
 0x167   : > { %p633_p12 = pnand %p632_p2, %p891_p6 }
 0x169   : > { %p634_p0 = pneg %p633_p12 }
 0x16b   : > { %p639_p10 = pnand %p637_p4, %p634_p0 }
 0x16d   : > { %642 = shalt.err (!%p639_p10)
}
 0x16e   : > { %484 = dma.vmem_to_hbm [thread:$0]  (%p891_p6), %s360_s26, 32, %s938_s3, [#allocation5]  }
 0x16f   : > { %676 = dma.done.wait (%p891_p6), [#allocation5], 32  }
 0x170   : > { %678 = vsyncadd (%p891_p6), [#allocation5], 4294967264 }
 0x171 PF: > { %s18_s17 = sadd.s32 1, %s701_s17   ;;  %s954_s23 = smov %s961_s12 }
 0x172   : > { %p15_p5 = scmp.ge.s32.totalorder %s18_s17, 4   ;;  %s955_s12 = smov %s685_s13 }
 0x173   : > { %s956_s13 = smov %s689_s14  ;;  %s957_s14 = smov %s834_s6 }
 0x174   : > { %s958_s15 = smov %s697_s16  ;;  %s959_s16 = smov %s954_s23 }
 0x175   :  { %17 = sbr.rel (!%p15_p5) target bundleno = 6 (0x6), region = 82 }
 0x17c   :  { %372 = vsyncpa [#allocation4], 1 }
 0x17d   :  { %374 = vsyncpa [#allocation4 + $0x1], 1 }
 0x17e   :  { %375 = vsyncpa [#allocation7], 1 }
 0x17f   :  { %376 = vsyncpa [#allocation5], 1 }
 0x180   :  { %378 = vsyncpa [#allocation5 + $0x1], 1 }

</bundles_post_ra>
